<compile_context>
chip_gen: v7x
topology: tpu7x:2x2x1
jax: 0.10.0
libtpu: 0.0.40
codegen_flags: <defaults>
</compile_context>

<pallas_src>
import functools

import jax
import jax.numpy as jnp
from jax.experimental import pallas as pl
from jax.experimental.pallas import tpu as pltpu


def _round_up(n, m):
    return ((n + m - 1) // m) * m


def _default_num_tiles():
    """One batch tile per TensorCore: 2 on dual-TC v7x, else 1."""
    try:
        kind = jax.devices()[0].device_kind.lower()
    except Exception:
        return 1
    return 2 if "v7" in kind else 1


def _default_mxu_dtype():
    """bf16 MXU operands on v6e/v7x; f32 on v5e / unknown."""
    try:
        kind = jax.devices()[0].device_kind.lower()
    except Exception:
        return jnp.float32
    return jnp.bfloat16 if ("v6" in kind or "v7" in kind) else jnp.float32


def prepare_params(w1, b1, w2, b2, *, mxu_dtype=jnp.float32):
    """One-time weight padding/casting, hoisted out of the per-call path.

    Hidden/output feature dims are padded to multiples of 128 so both matmuls
    and the output store are lane-dense.  Padding happens before the cast so
    padded rows/columns are exactly zero (required for correctness: padded
    hidden lanes evaluate to sigmoid(0)=0.5 and must hit zero w2 rows).
    """
    H = w1.shape[1]
    O = w2.shape[1]
    Hp = _round_up(H, 128)
    Op = _round_up(O, 128)
    w1_p = jnp.pad(w1, ((0, 0), (0, Hp - H))).astype(mxu_dtype)
    b1_p = jnp.pad(b1, ((0, 0), (0, Hp - H))).astype(jnp.float32)
    w2_p = jnp.pad(w2, ((0, Hp - H), (0, Op - O))).astype(mxu_dtype)
    b2_p = jnp.pad(b2, ((0, 0), (0, Op - O))).astype(jnp.float32)
    return w1_p, b1_p, w2_p, b2_p


def mlp_kernel(x_ref, w1_ref, b1_ref, w2_ref, b2_ref, o_ref):
    # MXU operand dtype follows the (pre-cast) weight dtype; accumulation is
    # always f32 via preferred_element_type.  Elementwise math stays f32.
    mxu_dtype = w1_ref.dtype
    x = x_ref[...].astype(mxu_dtype)

    # Hidden layer: x @ W1 + b1; sigmoid via a single EUP tanh.
    z = jnp.dot(x, w1_ref[...], preferred_element_type=jnp.float32) + b1_ref[...]
    h = 0.5 * jnp.tanh(0.5 * z) + 0.5

    # Output layer: h @ W2 + b2.
    out = jnp.dot(h.astype(mxu_dtype), w2_ref[...],
                  preferred_element_type=jnp.float32)
    o_ref[...] = (out + b2_ref[...]).astype(o_ref.dtype)


@functools.partial(jax.jit,
                   static_argnames=("out_units", "num_tiles", "out_dtype"))
def net_forward(x, w1_p, b1_p, w2_p, b2_p, *, out_units,
                num_tiles=1, out_dtype=jnp.float32):
    """x: (B, D_in); w1_p: (D_in, Hp); b1_p: (1, Hp); w2_p: (Hp, Op);
    b2_p: (1, Op) — padded params from `prepare_params`.

    num_tiles: batch tiles == TensorCores to feed (1 on v5e/v6e, 2 on v7x).
    Total VMEM footprint stays well under 2 MiB at these shapes.
    """
    B, D_in = x.shape
    Hp = w1_p.shape[1]
    Op = w2_p.shape[1]

    # One equal, sublane-aligned batch tile per TensorCore.
    TM = _round_up(max(1, pl.cdiv(B, num_tiles)), 8)
    Bp = TM * num_tiles
    x_p = jnp.pad(x, ((0, Bp - B), (0, 0)))

    in_bytes = (x_p.size * x_p.dtype.itemsize
                + w1_p.size * w1_p.dtype.itemsize
                + b1_p.size * b1_p.dtype.itemsize
                + w2_p.size * w2_p.dtype.itemsize
                + b2_p.size * b2_p.dtype.itemsize)
    out_bytes = Bp * Op * jnp.dtype(out_dtype).itemsize
    cost = pl.CostEstimate(
        flops=2 * Bp * (D_in * Hp + Hp * Op),
        transcendentals=Bp * Hp,
        bytes_accessed=in_bytes + out_bytes,
    )

    out_p = pl.pallas_call(
        mlp_kernel,
        out_shape=jax.ShapeDtypeStruct((Bp, Op), out_dtype),
        grid_spec=pltpu.PrefetchScalarGridSpec(
            num_scalar_prefetch=0,
            grid=(num_tiles,),
            in_specs=[
                # x: walk the batch dimension (one tile per TC).
                pl.BlockSpec((TM, D_in), lambda i: (i, 0)),
                # weights / biases: constant index_map -> VMEM-resident.
                pl.BlockSpec((D_in, Hp), lambda i: (0, 0)),
                pl.BlockSpec((1, Hp), lambda i: (0, 0)),
                pl.BlockSpec((Hp, Op), lambda i: (0, 0)),
                pl.BlockSpec((1, Op), lambda i: (0, 0)),
            ],
            out_specs=pl.BlockSpec((TM, Op), lambda i: (i, 0)),
        ),
        compiler_params=pltpu.CompilerParams(
            # Batch tiles are independent -> megacore sharding on v7x.
            dimension_semantics=("parallel",),
        ),
        cost_estimate=cost,
    )(x_p, w1_p, b1_p, w2_p, b2_p)

    # Strip batch / output-lane padding.
    return out_p[:B, :out_units]


def init_params(key, inp_shape, hidden, out_units):
    """Deterministic init mimicking nn.Linear's uniform(-1/sqrt(fan_in), +)."""
    k1, k2, k3, k4 = jax.random.split(key, 4)
    bound1 = 1.0 / jnp.sqrt(inp_shape)
    bound2 = 1.0 / jnp.sqrt(hidden)
    w1 = jax.random.uniform(k1, (inp_shape, hidden), jnp.float32, -bound1, bound1)
    b1 = jax.random.uniform(k2, (1, hidden), jnp.float32, -bound1, bound1)
    w2 = jax.random.uniform(k3, (hidden, out_units), jnp.float32, -bound2, bound2)
    b2 = jax.random.uniform(k4, (1, out_units), jnp.float32, -bound2, bound2)
    return w1, b1, w2, b2


if __name__ == "__main__":
    # Shapes consistent with Net(inp_shape, hidden_layers, out_units).
    batch, inp_shape, hidden, out_units = 256, 32, 64, 8

    key = jax.random.PRNGKey(0)
    kx, kp = jax.random.split(key)
    x = jax.random.normal(kx, (batch, inp_shape), jnp.float32)
    w1, b1, w2, b2 = init_params(kp, inp_shape, hidden, out_units)

    # Reference in plain JAX (same math as the PyTorch forward).
    ref = jax.nn.sigmoid(x @ w1 + b1) @ w2 + b2

    num_tiles = _default_num_tiles()

    # f32 MXU + f32 output — exact-ish path (v5e / precision-sensitive use).
    p_f32 = prepare_params(w1, b1, w2, b2, mxu_dtype=jnp.float32)
    out_f32 = jax.block_until_ready(
        net_forward(x, *p_f32, out_units=out_units, num_tiles=num_tiles,
                    out_dtype=jnp.float32))
    assert out_f32.shape == (batch, out_units)
    assert jnp.allclose(out_f32, ref, atol=1e-4, rtol=1e-4)

    # Generation-default MXU dtype (bf16 on v6e/v7x) + bf16 output writeback.
    p_fast = prepare_params(w1, b1, w2, b2, mxu_dtype=_default_mxu_dtype())
    out_fast = jax.block_until_ready(
        net_forward(x, *p_fast, out_units=out_units, num_tiles=num_tiles,
                    out_dtype=jnp.bfloat16))
    assert out_fast.shape == (batch, out_units)
    assert jnp.allclose(out_fast.astype(jnp.float32), ref, atol=3e-2, rtol=3e-2)

    print("KERNEL_OK")
</pallas_src>

<mosaic_0001>
module attributes {stable_mosaic.version = 11 : i64} {
  func.func @mlp_kernel(%arg0: i32, %arg1: memref<256x32xf32, #tpu.memory_space<vmem>>, %arg2: memref<32x128xf32, #tpu.memory_space<vmem>>, %arg3: memref<1x128xf32, #tpu.memory_space<vmem>>, %arg4: memref<128x128xf32, #tpu.memory_space<vmem>>, %arg5: memref<1x128xf32, #tpu.memory_space<vmem>>, %arg6: memref<256x128xf32, #tpu.memory_space<vmem>>) attributes {dimension_semantics = [#tpu.dimension_semantics<parallel>], iteration_bounds = array<i64: 1>, scalar_prefetch = 0 : i64, scratch_operands = 0 : i64, tpu.core_type = #tpu.core_type<tc>, window_params = [{transform_indices = @transform_0, window_bounds = array<i64: 256, 32>}, {pipeline_mode = #tpu.pipeline_mode<synchronous>, transform_indices = @transform_1, window_bounds = array<i64: 32, 128>}, {pipeline_mode = #tpu.pipeline_mode<synchronous>, transform_indices = @transform_2, window_bounds = array<i64: 1, 128>}, {pipeline_mode = #tpu.pipeline_mode<synchronous>, transform_indices = @transform_3, window_bounds = array<i64: 128, 128>}, {pipeline_mode = #tpu.pipeline_mode<synchronous>, transform_indices = @transform_4, window_bounds = array<i64: 1, 128>}, {transform_indices = @transform_5, window_bounds = array<i64: 256, 128>}]} {
    %c0 = arith.constant 0 : index
    %c0_0 = arith.constant 0 : index
    %0 = vector.load %arg1[%c0, %c0_0] : memref<256x32xf32, #tpu.memory_space<vmem>>, vector<256x32xf32>
    %c0_1 = arith.constant 0 : index
    %c0_2 = arith.constant 0 : index
    %1 = vector.load %arg2[%c0_1, %c0_2] : memref<32x128xf32, #tpu.memory_space<vmem>>, vector<32x128xf32>
    %cst = arith.constant dense<0.000000e+00> : vector<256x128xf32>
    %2 = tpu.matmul %0, %1, %cst {dimension_numbers = #tpu.dot_dimension_numbers<[1], [0], [0], [1], [0, 0, 1, 1], [], []>} : vector<256x32xf32>, vector<32x128xf32>, vector<256x128xf32> -> vector<256x128xf32>
    %c0_3 = arith.constant 0 : index
    %c0_4 = arith.constant 0 : index
    %3 = vector.load %arg3[%c0_3, %c0_4] : memref<1x128xf32, #tpu.memory_space<vmem>>, vector<1x128xf32>
    %4 = vector.broadcast %3 : vector<1x128xf32> to vector<256x128xf32>
    %5 = arith.addf %2, %4 : vector<256x128xf32>
    %cst_5 = arith.constant 5.000000e-01 : f32
    %6 = vector.broadcast %cst_5 : f32 to vector<256x128xf32>
    %7 = arith.mulf %6, %5 : vector<256x128xf32>
    %8 = math.tanh %7 : vector<256x128xf32>
    %cst_6 = arith.constant 5.000000e-01 : f32
    %9 = vector.broadcast %cst_6 : f32 to vector<256x128xf32>
    %10 = arith.mulf %9, %8 : vector<256x128xf32>
    %cst_7 = arith.constant 5.000000e-01 : f32
    %11 = vector.broadcast %cst_7 : f32 to vector<256x128xf32>
    %12 = arith.addf %10, %11 : vector<256x128xf32>
    %c0_8 = arith.constant 0 : index
    %c0_9 = arith.constant 0 : index
    %13 = vector.load %arg4[%c0_8, %c0_9] : memref<128x128xf32, #tpu.memory_space<vmem>>, vector<128x128xf32>
    %cst_10 = arith.constant dense<0.000000e+00> : vector<256x128xf32>
    %14 = tpu.matmul %12, %13, %cst_10 {dimension_numbers = #tpu.dot_dimension_numbers<[1], [0], [0], [1], [0, 0, 1, 1], [], []>} : vector<256x128xf32>, vector<128x128xf32>, vector<256x128xf32> -> vector<256x128xf32>
    %c0_11 = arith.constant 0 : index
    %c0_12 = arith.constant 0 : index
    %15 = vector.load %arg5[%c0_11, %c0_12] : memref<1x128xf32, #tpu.memory_space<vmem>>, vector<1x128xf32>
    %16 = vector.broadcast %15 : vector<1x128xf32> to vector<256x128xf32>
    %17 = arith.addf %14, %16 : vector<256x128xf32>
    %c0_13 = arith.constant 0 : index
    %c0_14 = arith.constant 0 : index
    %18 = vector.load %arg6[%c0_13, %c0_14] : memref<256x128xf32, #tpu.memory_space<vmem>>, vector<256x128xf32>
    tpu.vector_store %arg6[%c0_13, %c0_14], %17 {strides = array<i32>} : memref<256x128xf32, #tpu.memory_space<vmem>>, vector<256x128xf32>,
    return
  }
  func.func @transform_0(%arg0: i32) -> (i32, i32) {
    %c0_i32 = arith.constant 0 : i32
    %c0_i32_0 = arith.constant 0 : i32
    return %arg0, %c0_i32 : i32, i32
  }
  func.func @transform_1(%arg0: i32) -> (i32, i32) {
    %c0_i32 = arith.constant 0 : i32
    %c0_i32_0 = arith.constant 0 : i32
    %c0_i32_1 = arith.constant 0 : i32
    return %c0_i32, %c0_i32_0 : i32, i32
  }
  func.func @transform_2(%arg0: i32) -> (i32, i32) {
    %c0_i32 = arith.constant 0 : i32
    %c0_i32_0 = arith.constant 0 : i32
    %c0_i32_1 = arith.constant 0 : i32
    return %c0_i32, %c0_i32_0 : i32, i32
  }
  func.func @transform_3(%arg0: i32) -> (i32, i32) {
    %c0_i32 = arith.constant 0 : i32
    %c0_i32_0 = arith.constant 0 : i32
    %c0_i32_1 = arith.constant 0 : i32
    return %c0_i32, %c0_i32_0 : i32, i32
  }
  func.func @transform_4(%arg0: i32) -> (i32, i32) {
    %c0_i32 = arith.constant 0 : i32
    %c0_i32_0 = arith.constant 0 : i32
    %c0_i32_1 = arith.constant 0 : i32
    return %c0_i32, %c0_i32_0 : i32, i32
  }
  func.func @transform_5(%arg0: i32) -> (i32, i32) {
    %c0_i32 = arith.constant 0 : i32
    %c0_i32_0 = arith.constant 0 : i32
    return %arg0, %c0_i32 : i32, i32
  }
}

</mosaic_0001>

<bundles_post_ra>
// kernel: net_forward.1
= control target key start
LH: loop header
LB: loop body
LE: loop exit
PB: predicated region body
PF: predicated region fallthrough
CT: control target
= control target key end

     0   :  { %vm63_vm0 = vcmask 261120   ;;  %s1559_s1 = inlined_call_operand.vmem [shape: f32[32,128], index: 1, kind: input, shape index: {}]   ;;  %s1560_s0 = inlined_call_operand.vmem [shape: f32[256,32], index: 0, kind: input, shape index: {}]   ;;  %s1561_s3 = inlined_call_operand.vmem [shape: f32[128,128], index: 3, kind: input, shape index: {}]   ;;  %s1562_s2 = inlined_call_operand.vmem [shape: f32[1,128], index: 2, kind: input, shape index: {}]   ;;  %s1563_s4 = inlined_call_operand.vmem [shape: f32[1,128], index: 4, kind: input, shape index: {}]   ;;  %s1564_s5 = inlined_call_operand.vmem [shape: f32[256,128], index: 5, kind: output, shape index: {}]  }
   0x1   :  { %v52_v0 = vld [vmem:[%s1559_s1] sm:$0xff]  ;;  %v53_v1 = vld [vmem:[%s1559_s1 + $0x8] sm:$0xff]  ;;  %v54_v2 = vld [vmem:[%s1559_s1 + $0x10] sm:$0xff] }
   0x2   :  { %v1051_v3 = vpack.c.bf16 %v53_v1, %v52_v0  ;;  %v55_v4 = vld [vmem:[%s1559_s1 + $0x18] sm:$0xff]  ;;  %v20_v5 = vld [vmem:[%s1560_s0] sm:$0xff]  ;;  %v21_v7 = vld [vmem:[%s1560_s0 + $0x8] sm:$0xff] }
   0x3   :  { %v1055_v6 = vpack.c.bf16 %v55_v4, %v54_v2  ;;  %923 = vmatprep.mubr.msk.f32.mxu0 %vm63_vm0, %v20_v5  ;;  %v22_v8 = vld [vmem:[%s1560_s0 + $0x10] sm:$0xff]  ;;  %v23_v9 = vld [vmem:[%s1560_s0 + $0x18] sm:$0xff]  ;;  %v513_v10 = vld [vmem:[%s1561_s3] sm:$0xff] }
   0x4   :  { %1052 = vmatprep.subr.bf16.mxu0 %v1051_v3  ;;  %v514_v11 = vld [vmem:[%s1561_s3 + $0x8] sm:$0xff]  ;;  %v515_v12 = vld [vmem:[%s1561_s3 + $0x10] sm:$0xff]  ;;  %v24_v13 = vld [vmem:[%s1560_s0 + $0x20] sm:$0xff] }
   0x5   :  { %1054 = vmatpush3.bf16.msra.mxu0 %v1051_v3  ;;  %v1059_v14 = vpack.c.bf16 %v514_v11, %v513_v10  ;;  %v516_v15 = vld [vmem:[%s1561_s3 + $0x18] sm:$0xff]  ;;  %v517_v17 = vld [vmem:[%s1561_s3 + $0x20] sm:$0xff]  ;;  %v518_v18 = vld [vmem:[%s1561_s3 + $0x28] sm:$0xff] }
   0x6   :  { %1056 = vmatprep.subr.bf16.mxu0 %v1055_v6  ;;  %v1063_v16 = vpack.c.bf16 %v516_v15, %v515_v12  ;;  %v25_v19 = vld [vmem:[%s1560_s0 + $0x28] sm:$0xff]  ;;  %v26_v20 = vld [vmem:[%s1560_s0 + $0x30] sm:$0xff]  ;;  %v1067_v21 = vpack.c.bf16 %v518_v18, %v517_v17  ;;  %v27_v22 = vld [vmem:[%s1560_s0 + $0x38] sm:$0xff] }
   0x7   :  { %1091 = vmatprep.subr.bf16.mxu1 %v1059_v14  ;;  %v28_v23 = vld [vmem:[%s1560_s0 + $0x40] sm:$0xff]  ;;  %v29_v24 = vld [vmem:[%s1560_s0 + $0x48] sm:$0xff]  ;;  %v30_v25 = vld [vmem:[%s1560_s0 + $0x50] sm:$0xff] }
   0x8   :  { %1099 = vmatpush3.bf16.msra.mxu1 %v1059_v14  ;;  %v31_v26 = vld [vmem:[%s1560_s0 + $0x58] sm:$0xff]  ;;  %v32_v27 = vld [vmem:[%s1560_s0 + $0x60] sm:$0xff]  ;;  %v33_v28 = vld [vmem:[%s1560_s0 + $0x68] sm:$0xff] }
   0x9   :  { %1058 = vmatpush3.bf16.msra.mxu0 %v1055_v6  ;;  %1092 = vmatprep.subr.bf16.mxu1 %v1063_v16  ;;  %v34_v29 = vld [vmem:[%s1560_s0 + $0x70] sm:$0xff]  ;;  %v35_v30 = vld [vmem:[%s1560_s0 + $0x78] sm:$0xff]  ;;  %v36_v31 = vld [vmem:[%s1560_s0 + $0x80] sm:$0xff] }
   0xa   :  { %1060 = vmatprep.subr.bf16.mxu0 %v1059_v14  ;;  %v37_v32 = vld [vmem:[%s1560_s0 + $0x88] sm:$0xff]  ;;  %v38_v33 = vld [vmem:[%s1560_s0 + $0x90] sm:$0xff]  ;;  %v39_v34 = vld [vmem:[%s1560_s0 + $0x98] sm:$0xff] }
   0xb   :  { %v40_v35 = vld [vmem:[%s1560_s0 + $0xa0] sm:$0xff]  ;;  %v41_v36 = vld [vmem:[%s1560_s0 + $0xa8] sm:$0xff]  ;;  %v42_v37 = vld [vmem:[%s1560_s0 + $0xb0] sm:$0xff] }
   0xc   :  { %924 = vmatmul.mubr.msk.f32.vlgmr.msra.gmra.mrb[0].mxu0 %vm63_vm0, %v21_v7  ;;  %1100 = vmatpush3.bf16.msra.mxu1 %v1063_v16  ;;  %v43_v38 = vld [vmem:[%s1560_s0 + $0xb8] sm:$0xff]  ;;  %v44_v39 = vld [vmem:[%s1560_s0 + $0xc0] sm:$0xff]  ;;  %v45_v40 = vld [vmem:[%s1560_s0 + $0xc8] sm:$0xff] }
   0xd   :  { %926 = vmatprep.mubr.msk.f32.mxu0 %vm63_vm0, %v22_v8  ;;  %1062 = vmatpush3.bf16.msra.mxu0 %v1059_v14  ;;  %v46_v41 = vld [vmem:[%s1560_s0 + $0xd0] sm:$0xff]  ;;  %v47_v42 = vld [vmem:[%s1560_s0 + $0xd8] sm:$0xff]  ;;  %v48_v43 = vld [vmem:[%s1560_s0 + $0xe0] sm:$0xff] }
   0xe   :  { %1064 = vmatprep.subr.bf16.mxu0 %v1063_v16  ;;  %1093 = vmatprep.subr.bf16.mxu1 %v1067_v21  ;;  %v49_v44 = vld [vmem:[%s1560_s0 + $0xe8] sm:$0xff]  ;;  %v50_v45 = vld [vmem:[%s1560_s0 + $0xf0] sm:$0xff]  ;;  %v51_v46 = vld [vmem:[%s1560_s0 + $0xf8] sm:$0xff] }
   0xf   :  { %v519_v47 = vld [vmem:[%s1561_s3 + $0x30] sm:$0xff]  ;;  %v520_v48 = vld [vmem:[%s1561_s3 + $0x38] sm:$0xff]  ;;  %v521_v50 = vld [vmem:[%s1561_s3 + $0x40] sm:$0xff] }
  0x10   :  { %927 = vmatmul.mubr.msk.f32.gmra.mrb[2].mxu0 %vm63_vm0, %v23_v9  ;;  %1101 = vmatpush3.bf16.msra.mxu1 %v1067_v21  ;;  %v1071_v49 = vpack.c.bf16 %v520_v48, %v519_v47  ;;  %v522_v51 = vld [vmem:[%s1561_s3 + $0x48] sm:$0xff]  ;;  %v523_v53 = vld [vmem:[%s1561_s3 + $0x50] sm:$0xff]  ;;  %v524_v54 = vld [vmem:[%s1561_s3 + $0x58] sm:$0xff] }
  0x11   :  { %929 = vmatprep.mubr.msk.f32.mxu0 %vm63_vm0, %v24_v13  ;;  %1066 = vmatpush3.bf16.msra.mxu0 %v1063_v16  ;;  %v1075_v52 = vpack.c.bf16 %v522_v51, %v521_v50  ;;  %v1079_v55 = vpack.c.bf16 %v524_v54, %v523_v53  ;;  %v525_v56 = vld [vmem:[%s1561_s3 + $0x60] sm:$0xff]  ;;  %v526_v57 = vld [vmem:[%s1561_s3 + $0x68] sm:$0xff]  ;;  %v527_v59 = vld [vmem:[%s1561_s3 + $0x70] sm:$0xff] }
  0x12   :  { %1068 = vmatprep.subr.bf16.mxu0 %v1067_v21  ;;  %1094 = vmatprep.subr.bf16.mxu1 %v1071_v49  ;;  %v1083_v58 = vpack.c.bf16 %v526_v57, %v525_v56  ;;  %v528_v60 = vld [vmem:[%s1561_s3 + $0x78] sm:$0xff]  ;;  %v1392_v62 = vld [vmem:[%s1562_s2] ss:$0 sm:$0xff] }
  0x13   :  { %v1087_v61 = vpack.c.bf16 %v528_v60, %v527_v59 }
  0x14   :  { %930 = vmatmul.mubr.msk.f32.gmra.mrb[4].mxu0 %vm63_vm0, %v25_v19  ;;  %1102 = vmatpush3.bf16.msra.mxu1 %v1071_v49 }
  0x15   :  { %932 = vmatprep.mubr.msk.f32.mxu0 %vm63_vm0, %v26_v20  ;;  %1070 = vmatpush3.bf16.msra.mxu0 %v1067_v21 }
  0x16   :  { %1072 = vmatprep.subr.bf16.mxu0 %v1071_v49  ;;  %1095 = vmatprep.subr.bf16.mxu1 %v1075_v52 }
  0x18   :  { %933 = vmatmul.mubr.msk.f32.gmra.mrb[6].mxu0 %vm63_vm0, %v27_v22  ;;  %1103 = vmatpush3.bf16.msra.mxu1 %v1075_v52 }
  0x19   :  { %935 = vmatprep.mubr.msk.f32.mxu0 %vm63_vm0, %v28_v23  ;;  %1074 = vmatpush3.bf16.msra.mxu0 %v1071_v49 }
  0x1a   :  { %1076 = vmatprep.subr.bf16.mxu0 %v1075_v52  ;;  %1096 = vmatprep.subr.bf16.mxu1 %v1079_v55 }
  0x1c   :  { %936 = vmatmul.mubr.msk.f32.gmra.mrb[8].mxu0 %vm63_vm0, %v29_v24  ;;  %1104 = vmatpush3.bf16.msra.mxu1 %v1079_v55 }
  0x1d   :  { %938 = vmatprep.mubr.msk.f32.mxu0 %vm63_vm0, %v30_v25  ;;  %1078 = vmatpush3.bf16.msra.mxu0 %v1075_v52 }
  0x1e   :  { %1080 = vmatprep.subr.bf16.mxu0 %v1079_v55  ;;  %1097 = vmatprep.subr.bf16.mxu1 %v1083_v58 }
  0x20   :  { %939 = vmatmul.mubr.msk.f32.gmra.mrb[10].mxu0 %vm63_vm0, %v31_v26  ;;  %1105 = vmatpush3.bf16.msra.mxu1 %v1083_v58 }
  0x21   :  { %941 = vmatprep.mubr.msk.f32.mxu0 %vm63_vm0, %v32_v27  ;;  %1082 = vmatpush3.bf16.msra.mxu0 %v1079_v55 }
  0x22   :  { %1084 = vmatprep.subr.bf16.mxu0 %v1083_v58  ;;  %1098 = vmatprep.subr.bf16.mxu1 %v1087_v61 }
  0x24   :  { %942 = vmatmul.mubr.msk.f32.gmra.mrb[12].mxu0 %vm63_vm0, %v33_v28  ;;  %1106 = vmatpush3.bf16.msra.mxu1 %v1087_v61 }
  0x25   :  { %944 = vmatprep.mubr.msk.f32.mxu0 %vm63_vm0, %v34_v29  ;;  %1086 = vmatpush3.bf16.msra.mxu0 %v1083_v58 }
  0x26   :  { %1088 = vmatprep.subr.bf16.mxu0 %v1087_v61 }
  0x28   :  { %945 = vmatmul.mubr.msk.f32.gmra.mrb[14].mxu0 %vm63_vm0, %v35_v30 }
  0x29   :  { %947 = vmatprep.mubr.msk.f32.mxu0 %vm63_vm0, %v36_v31  ;;  %1090 = vmatpush3.bf16.msra.mxu0 %v1087_v61 }
  0x2c   :  { %948 = vmatmul.mubr.msk.f32.gmra.mrb[16].mxu0 %vm63_vm0, %v37_v32 }
  0x2d   :  { %950 = vmatprep.mubr.msk.f32.mxu0 %vm63_vm0, %v38_v33 }
  0x30   :  { %951 = vmatmul.mubr.msk.f32.gmra.mrb[18].mxu0 %vm63_vm0, %v39_v34 }
  0x31   :  { %953 = vmatprep.mubr.msk.f32.mxu0 %vm63_vm0, %v40_v35 }
  0x34   :  { %954 = vmatmul.mubr.msk.f32.gmra.mrb[20].mxu0 %vm63_vm0, %v41_v36 }
  0x35   :  { %956 = vmatprep.mubr.msk.f32.mxu0 %vm63_vm0, %v42_v37 }
  0x38   :  { %957 = vmatmul.mubr.msk.f32.gmra.mrb[22].mxu0 %vm63_vm0, %v43_v38 }
  0x39   :  { %959 = vmatprep.mubr.msk.f32.mxu0 %vm63_vm0, %v44_v39 }
  0x3c   :  { %960 = vmatmul.mubr.msk.f32.gmra.mrb[24].mxu0 %vm63_vm0, %v45_v40 }
  0x3d   :  { %962 = vmatprep.mubr.msk.f32.mxu0 %vm63_vm0, %v46_v41 }
  0x40   :  { %963 = vmatmul.mubr.msk.f32.gmra.mrb[26].mxu0 %vm63_vm0, %v47_v42 }
  0x41   :  { %965 = vmatprep.mubr.msk.f32.mxu0 %vm63_vm0, %v48_v43 }
  0x44   :  { %966 = vmatmul.mubr.msk.f32.gmra.mrb[28].mxu0 %vm63_vm0, %v49_v44 }
  0x45   :  { %968 = vmatprep.mubr.msk.f32.mxu0 %vm63_vm0, %v50_v45 }
  0x48   :  { %969 = vmatmul.mubr.msk.f32.gmra.mrb[30].mxu0 %vm63_vm0, %v51_v46 }
  0xdf   :  { %v925_v63 = vpop.f32.mrb[0].mxu0 }
  0xe0   :  { %v232_v0 = vadd.f32 %v925_v63, %v1392_v62  ;;  %v226_v1 = vpop.f32.mrb[1].mxu0 }
  0xe1   :  { %v227_v2 = vadd.f32 %v1392_v62, %v226_v1 }
  0xe2   :  { %v386_v3 = vmul.f32 0.5, %v232_v0 }
  0xe3   :  { %v385_v4 = vmul.f32 0.5, %v227_v2  ;;  %v928_v5 = vpop.f32.mrb[2].mxu0 }
  0xe4   :  { %1107 = vtanh.f32 %v386_v3  ;;  %v242_v6 = vadd.f32 %v928_v5, %v1392_v62  ;;  %v236_v7 = vpop.f32.mrb[3].mxu0 }
  0xe5   :  { %1109 = vtanh.f32 %v385_v4  ;;  %v237_v8 = vadd.f32 %v1392_v62, %v236_v7 }
  0xe6   :  { %v388_v9 = vmul.f32 0.5, %v242_v6 }
  0xe7   :  { %v387_v10 = vmul.f32 0.5, %v237_v8  ;;  %v931_v11 = vpop.f32.mrb[4].mxu0 }
  0xe8   :  { %1111 = vtanh.f32 %v388_v9  ;;  %v252_v12 = vadd.f32 %v931_v11, %v1392_v62  ;;  %v246_v13 = vpop.f32.mrb[5].mxu0 }
  0xe9   :  { %1113 = vtanh.f32 %v387_v10  ;;  %v247_v14 = vadd.f32 %v1392_v62, %v246_v13 }
  0xea   :  { %v390_v15 = vmul.f32 0.5, %v252_v12 }
  0xeb   :  { %v389_v16 = vmul.f32 0.5, %v247_v14  ;;  %v934_v17 = vpop.f32.mrb[6].mxu0 }
  0xec   :  { %1115 = vtanh.f32 %v390_v15  ;;  %v262_v18 = vadd.f32 %v934_v17, %v1392_v62  ;;  %v256_v19 = vpop.f32.mrb[7].mxu0 }
  0xed   :  { %1117 = vtanh.f32 %v389_v16  ;;  %v257_v20 = vadd.f32 %v1392_v62, %v256_v19 }
  0xee   :  { %v1108_v21 = vpop.eup %1107  ;;  %v392_v22 = vmul.f32 0.5, %v262_v18 }
  0xef   :  { %v1110_v23 = vpop.eup %1109  ;;  %v450_v24 = vmul.f32 0.5, %v1108_v21  ;;  %v391_v25 = vmul.f32 0.5, %v257_v20  ;;  %v937_v26 = vpop.f32.mrb[8].mxu0 }
  0xf0   :  { %v449_v27 = vmul.f32 0.5, %v1110_v23  ;;  %1119 = vtanh.f32 %v392_v22  ;;  %v272_v28 = vadd.f32 %v937_v26, %v1392_v62  ;;  %v266_v29 = vpop.f32.mrb[9].mxu0 }
  0xf1   :  { %1121 = vtanh.f32 %v391_v25  ;;  %v267_v30 = vadd.f32 %v1392_v62, %v266_v29  ;;  %v482_v35 = vadd.f32 0.5, %v450_v24 }
  0xf2   :  { %v1112_v31 = vpop.eup %1111  ;;  %v394_v32 = vmul.f32 0.5, %v272_v28  ;;  %v481_v33 = vadd.f32 0.5, %v449_v27 }
  0xf3   :  { %v1114_v34 = vpop.eup %1113  ;;  %v452_v36 = vmul.f32 0.5, %v1112_v31  ;;  %v393_v37 = vmul.f32 0.5, %v267_v30  ;;  %v940_v38 = vpop.f32.mrb[10].mxu0 }
  0xf4   :  { %v451_v39 = vmul.f32 0.5, %v1114_v34  ;;  %1123 = vtanh.f32 %v394_v32  ;;  %v282_v40 = vadd.f32 %v940_v38, %v1392_v62  ;;  %v276_v41 = vpop.f32.mrb[11].mxu0  ;;  %1003 = vmatprep.mubr.f32.mxu0 %v481_v33 }
  0xf5   :  { %1125 = vtanh.f32 %v393_v37  ;;  %v277_v42 = vadd.f32 %v1392_v62, %v276_v41  ;;  %1004 = vmatmul.mubr.f32.vlgmr.msra.gmra.mrb[32].mxu0 %v482_v35  ;;  %v484_v50 = vadd.f32 0.5, %v452_v36 }
  0xf6   :  { %v1116_v43 = vpop.eup %1115  ;;  %v396_v44 = vmul.f32 0.5, %v282_v40  ;;  %v483_v45 = vadd.f32 0.5, %v451_v39 }
  0xf7   :  { %v1118_v46 = vpop.eup %1117  ;;  %v454_v47 = vmul.f32 0.5, %v1116_v43  ;;  %v395_v48 = vmul.f32 0.5, %v277_v42  ;;  %v943_v49 = vpop.f32.mrb[12].mxu0 }
  0xf8   :  { %v453_v51 = vmul.f32 0.5, %v1118_v46  ;;  %1127 = vtanh.f32 %v396_v44  ;;  %v292_v52 = vadd.f32 %v943_v49, %v1392_v62  ;;  %v286_v53 = vpop.f32.mrb[13].mxu0  ;;  %1006 = vmatprep.mubr.f32.mxu0 %v483_v45 }
  0xf9   :  { %1129 = vtanh.f32 %v395_v48  ;;  %v287_v54 = vadd.f32 %v1392_v62, %v286_v53  ;;  %1007 = vmatmul.mubr.f32.gmra.mrb[34].mxu0 %v484_v50  ;;  %v486_v63 = vadd.f32 0.5, %v454_v47 }
  0xfa   :  { %v1120_v55 = vpop.eup %1119  ;;  %v398_v56 = vmul.f32 0.5, %v292_v52  ;;  %v485_v57 = vadd.f32 0.5, %v453_v51 }
  0xfb   :  { %v1122_v58 = vpop.eup %1121  ;;  %v456_v59 = vmul.f32 0.5, %v1120_v55  ;;  %v397_v60 = vmul.f32 0.5, %v287_v54  ;;  %v946_v61 = vpop.f32.mrb[14].mxu0 }
  0xfc   :  { %1131 = vtanh.f32 %v398_v56  ;;  %v302_v0 = vadd.f32 %v946_v61, %v1392_v62  ;;  %v296_v1 = vpop.f32.mrb[15].mxu0  ;;  %1009 = vmatprep.mubr.f32.mxu0 %v485_v57  ;;  %v455_v2 = vmul.f32 0.5, %v1122_v58 }
  0xfd   :  { %1133 = vtanh.f32 %v397_v60  ;;  %v297_v3 = vadd.f32 %v1392_v62, %v296_v1  ;;  %1010 = vmatmul.mubr.f32.gmra.mrb[36].mxu0 %v486_v63  ;;  %v488_v11 = vadd.f32 0.5, %v456_v59 }
  0xfe   :  { %v1124_v4 = vpop.eup %1123  ;;  %v400_v5 = vmul.f32 0.5, %v302_v0  ;;  %v487_v6 = vadd.f32 0.5, %v455_v2 }
  0xff   :  { %v1126_v7 = vpop.eup %1125  ;;  %v458_v8 = vmul.f32 0.5, %v1124_v4  ;;  %v399_v9 = vmul.f32 0.5, %v297_v3  ;;  %v949_v10 = vpop.f32.mrb[16].mxu0 }
 0x100   :  { %v457_v12 = vmul.f32 0.5, %v1126_v7  ;;  %1135 = vtanh.f32 %v400_v5  ;;  %v312_v13 = vadd.f32 %v949_v10, %v1392_v62  ;;  %v306_v14 = vpop.f32.mrb[17].mxu0  ;;  %1012 = vmatprep.mubr.f32.mxu1 %v487_v6 }
 0x101   :  { %1137 = vtanh.f32 %v399_v9  ;;  %v307_v15 = vadd.f32 %v1392_v62, %v306_v14  ;;  %1013 = vmatmul.mubr.f32.vlgmr.msra.gmra.mrb[0].mxu1 %v488_v11  ;;  %v490_v23 = vadd.f32 0.5, %v458_v8 }
 0x102   :  { %v1128_v16 = vpop.eup %1127  ;;  %v402_v17 = vmul.f32 0.5, %v312_v13  ;;  %v489_v18 = vadd.f32 0.5, %v457_v12 }
 0x103   :  { %v1130_v19 = vpop.eup %1129  ;;  %v460_v20 = vmul.f32 0.5, %v1128_v16  ;;  %v401_v21 = vmul.f32 0.5, %v307_v15  ;;  %v952_v22 = vpop.f32.mrb[18].mxu0 }
 0x104   :  { %v459_v24 = vmul.f32 0.5, %v1130_v19  ;;  %1139 = vtanh.f32 %v402_v17  ;;  %v322_v25 = vadd.f32 %v952_v22, %v1392_v62  ;;  %v316_v26 = vpop.f32.mrb[19].mxu0  ;;  %1015 = vmatprep.mubr.f32.mxu1 %v489_v18 }
 0x105   :  { %1141 = vtanh.f32 %v401_v21  ;;  %v317_v27 = vadd.f32 %v1392_v62, %v316_v26  ;;  %1016 = vmatmul.mubr.f32.gmra.mrb[2].mxu1 %v490_v23  ;;  %v492_v35 = vadd.f32 0.5, %v460_v20 }
 0x106   :  { %v1132_v28 = vpop.eup %1131  ;;  %v404_v29 = vmul.f32 0.5, %v322_v25  ;;  %v491_v30 = vadd.f32 0.5, %v459_v24 }
 0x107   :  { %v1134_v31 = vpop.eup %1133  ;;  %v462_v32 = vmul.f32 0.5, %v1132_v28  ;;  %v403_v33 = vmul.f32 0.5, %v317_v27  ;;  %v955_v34 = vpop.f32.mrb[20].mxu0 }
 0x108   :  { %v461_v36 = vmul.f32 0.5, %v1134_v31  ;;  %1143 = vtanh.f32 %v404_v29  ;;  %v332_v37 = vadd.f32 %v955_v34, %v1392_v62  ;;  %v326_v38 = vpop.f32.mrb[21].mxu0  ;;  %1018 = vmatprep.mubr.f32.mxu1 %v491_v30 }
 0x109   :  { %1145 = vtanh.f32 %v403_v33  ;;  %v327_v39 = vadd.f32 %v1392_v62, %v326_v38  ;;  %1019 = vmatmul.mubr.f32.gmra.mrb[4].mxu1 %v492_v35  ;;  %v494_v47 = vadd.f32 0.5, %v462_v32 }
 0x10a   :  { %v1136_v40 = vpop.eup %1135  ;;  %v406_v41 = vmul.f32 0.5, %v332_v37  ;;  %v493_v42 = vadd.f32 0.5, %v461_v36 }
 0x10b   :  { %v1138_v43 = vpop.eup %1137  ;;  %v464_v44 = vmul.f32 0.5, %v1136_v40  ;;  %v405_v45 = vmul.f32 0.5, %v327_v39  ;;  %v958_v46 = vpop.f32.mrb[22].mxu0 }
 0x10c   :  { %v463_v48 = vmul.f32 0.5, %v1138_v43  ;;  %1147 = vtanh.f32 %v406_v41  ;;  %v342_v49 = vadd.f32 %v958_v46, %v1392_v62  ;;  %v336_v50 = vpop.f32.mrb[23].mxu0  ;;  %1021 = vmatprep.mubr.f32.mxu1 %v493_v42 }
 0x10d   :  { %1149 = vtanh.f32 %v405_v45  ;;  %v337_v51 = vadd.f32 %v1392_v62, %v336_v50  ;;  %1022 = vmatmul.mubr.f32.gmra.mrb[6].mxu1 %v494_v47  ;;  %v496_v59 = vadd.f32 0.5, %v464_v44 }
 0x10e   :  { %v1140_v52 = vpop.eup %1139  ;;  %v408_v53 = vmul.f32 0.5, %v342_v49  ;;  %v495_v54 = vadd.f32 0.5, %v463_v48 }
 0x10f   :  { %v1142_v55 = vpop.eup %1141  ;;  %v466_v56 = vmul.f32 0.5, %v1140_v52  ;;  %v407_v57 = vmul.f32 0.5, %v337_v51  ;;  %v961_v58 = vpop.f32.mrb[24].mxu0 }
 0x110   :  { %v465_v60 = vmul.f32 0.5, %v1142_v55  ;;  %1151 = vtanh.f32 %v408_v53  ;;  %v352_v61 = vadd.f32 %v961_v58, %v1392_v62  ;;  %v346_v63 = vpop.f32.mrb[25].mxu0  ;;  %1024 = vmatprep.mubr.f32.mxu1 %v495_v54 }
 0x111   :  { %1153 = vtanh.f32 %v407_v57  ;;  %v347_v0 = vadd.f32 %v1392_v62, %v346_v63  ;;  %1025 = vmatmul.mubr.f32.gmra.mrb[8].mxu1 %v496_v59  ;;  %v498_v8 = vadd.f32 0.5, %v466_v56 }
 0x112   :  { %v1144_v1 = vpop.eup %1143  ;;  %v410_v2 = vmul.f32 0.5, %v352_v61  ;;  %v497_v3 = vadd.f32 0.5, %v465_v60 }
 0x113   :  { %v1146_v4 = vpop.eup %1145  ;;  %v468_v5 = vmul.f32 0.5, %v1144_v1  ;;  %v409_v6 = vmul.f32 0.5, %v347_v0  ;;  %v964_v7 = vpop.f32.mrb[26].mxu0  ;;  %v1429_v1 = vld [vmem:[%s1563_s4] ss:$0 sm:$0xff] }
 0x114   :  { %v467_v9 = vmul.f32 0.5, %v1146_v4  ;;  %1155 = vtanh.f32 %v410_v2  ;;  %v362_v10 = vadd.f32 %v964_v7, %v1392_v62  ;;  %v356_v11 = vpop.f32.mrb[27].mxu0  ;;  %1027 = vmatprep.mubr.f32.mxu1 %v497_v3 }
 0x115   :  { %1157 = vtanh.f32 %v409_v6  ;;  %v357_v12 = vadd.f32 %v1392_v62, %v356_v11  ;;  %1028 = vmatmul.mubr.f32.gmra.mrb[10].mxu1 %v498_v8  ;;  %v500_v20 = vadd.f32 0.5, %v468_v5 }
 0x116   :  { %v1148_v13 = vpop.eup %1147  ;;  %v412_v14 = vmul.f32 0.5, %v362_v10  ;;  %v499_v15 = vadd.f32 0.5, %v467_v9 }
 0x117   :  { %v1150_v16 = vpop.eup %1149  ;;  %v470_v17 = vmul.f32 0.5, %v1148_v13  ;;  %v411_v18 = vmul.f32 0.5, %v357_v12  ;;  %v967_v19 = vpop.f32.mrb[28].mxu0 }
 0x118   :  { %v469_v21 = vmul.f32 0.5, %v1150_v16  ;;  %1159 = vtanh.f32 %v412_v14  ;;  %v372_v22 = vadd.f32 %v967_v19, %v1392_v62  ;;  %v366_v23 = vpop.f32.mrb[29].mxu0  ;;  %1030 = vmatprep.mubr.f32.mxu1 %v499_v15 }
 0x119   :  { %1161 = vtanh.f32 %v411_v18  ;;  %v367_v24 = vadd.f32 %v1392_v62, %v366_v23  ;;  %1031 = vmatmul.mubr.f32.gmra.mrb[12].mxu1 %v500_v20  ;;  %v502_v32 = vadd.f32 0.5, %v470_v17 }
 0x11a   :  { %v1152_v25 = vpop.eup %1151  ;;  %v414_v26 = vmul.f32 0.5, %v372_v22  ;;  %v501_v27 = vadd.f32 0.5, %v469_v21 }
 0x11b   :  { %v1154_v28 = vpop.eup %1153  ;;  %v472_v29 = vmul.f32 0.5, %v1152_v25  ;;  %v413_v30 = vmul.f32 0.5, %v367_v24  ;;  %v970_v31 = vpop.f32.mrb[30].mxu0 }
 0x11c   :  { %v471_v33 = vmul.f32 0.5, %v1154_v28  ;;  %1163 = vtanh.f32 %v414_v26  ;;  %v382_v34 = vadd.f32 %v970_v31, %v1392_v62  ;;  %v376_v35 = vpop.f32.mrb[31].mxu0  ;;  %1033 = vmatprep.mubr.f32.mxu1 %v501_v27 }
 0x11d   :  { %1165 = vtanh.f32 %v413_v30  ;;  %v377_v36 = vadd.f32 %v1392_v62, %v376_v35  ;;  %1034 = vmatmul.mubr.f32.gmra.mrb[14].mxu1 %v502_v32  ;;  %v504_v43 = vadd.f32 0.5, %v472_v29 }
 0x11e   :  { %v1156_v37 = vpop.eup %1155  ;;  %v416_v38 = vmul.f32 0.5, %v382_v34  ;;  %v503_v39 = vadd.f32 0.5, %v471_v33 }
 0x11f   :  { %v1158_v40 = vpop.eup %1157  ;;  %v474_v41 = vmul.f32 0.5, %v1156_v37  ;;  %v415_v42 = vmul.f32 0.5, %v377_v36 }
 0x120   :  { %v473_v44 = vmul.f32 0.5, %v1158_v40  ;;  %1167 = vtanh.f32 %v416_v38  ;;  %1036 = vmatprep.mubr.f32.mxu1 %v503_v39 }
 0x121   :  { %1169 = vtanh.f32 %v415_v42  ;;  %1037 = vmatmul.mubr.f32.gmra.mrb[16].mxu1 %v504_v43  ;;  %v506_v49 = vadd.f32 0.5, %v474_v41 }
 0x122   :  { %v1160_v45 = vpop.eup %1159  ;;  %v505_v46 = vadd.f32 0.5, %v473_v44 }
 0x123   :  { %v1162_v47 = vpop.eup %1161  ;;  %v476_v48 = vmul.f32 0.5, %v1160_v45 }
 0x124   :  { %v475_v50 = vmul.f32 0.5, %v1162_v47  ;;  %1039 = vmatprep.mubr.f32.mxu1 %v505_v46 }
 0x125   :  { %1040 = vmatmul.mubr.f32.gmra.mrb[18].mxu1 %v506_v49  ;;  %v508_v54 = vadd.f32 0.5, %v476_v48 }
 0x126   :  { %v1164_v62 = vpop.eup %1163  ;;  %v507_v51 = vadd.f32 0.5, %v475_v50 }
 0x127   :  { %v1166_v52 = vpop.eup %1165  ;;  %v478_v53 = vmul.f32 0.5, %v1164_v62 }
 0x128   :  { %v477_v55 = vmul.f32 0.5, %v1166_v52  ;;  %1042 = vmatprep.mubr.f32.mxu1 %v507_v51 }
 0x129   :  { %1043 = vmatmul.mubr.f32.gmra.mrb[20].mxu1 %v508_v54  ;;  %v510_v60 = vadd.f32 0.5, %v478_v53 }
 0x12a   :  { %v1168_v56 = vpop.eup %1167  ;;  %v509_v57 = vadd.f32 0.5, %v477_v55 }
 0x12b   :  { %v1170_v58 = vpop.eup %1169  ;;  %v480_v59 = vmul.f32 0.5, %v1168_v56 }
 0x12c   :  { %v479_v61 = vmul.f32 0.5, %v1170_v58  ;;  %1045 = vmatprep.mubr.f32.mxu1 %v509_v57 }
 0x12d   :  { %1046 = vmatmul.mubr.f32.gmra.mrb[22].mxu1 %v510_v60  ;;  %v512_v0 = vadd.f32 0.5, %v480_v59 }
 0x12e   :  { %v511_v63 = vadd.f32 0.5, %v479_v61 }
 0x130   :  { %1048 = vmatprep.mubr.f32.mxu1 %v511_v63 }
 0x131   :  { %1049 = vmatmul.mubr.f32.gmra.mrb[24].mxu1 %v512_v0 }
 0x1c8   :  { %v1005_v2 = vpop.f32.mrb[32].mxu0 }
 0x1c9   :  { %v608_v3 = vadd.f32 %v1005_v2, %v1429_v1  ;;  %v602_v4 = vpop.f32.mrb[33].mxu0 }
 0x1ca   :  { %v603_v5 = vadd.f32 %v1429_v1, %v602_v4 }
 0x1cb   :  { %762 = vst [vmem:[%s1564_s5 + $0x8] sm:$0xff] %v608_v3 }
 0x1cc   :  { %761 = vst [vmem:[%s1564_s5] sm:$0xff] %v603_v5  ;;  %v1008_v6 = vpop.f32.mrb[34].mxu0 }
 0x1cd   :  { %v618_v7 = vadd.f32 %v1008_v6, %v1429_v1  ;;  %v612_v8 = vpop.f32.mrb[35].mxu0 }
 0x1ce   :  { %v613_v9 = vadd.f32 %v1429_v1, %v612_v8 }
 0x1cf   :  { %764 = vst [vmem:[%s1564_s5 + $0x18] sm:$0xff] %v618_v7 }
 0x1d0   :  { %763 = vst [vmem:[%s1564_s5 + $0x10] sm:$0xff] %v613_v9  ;;  %v1011_v10 = vpop.f32.mrb[36].mxu0 }
 0x1d1   :  { %v628_v11 = vadd.f32 %v1011_v10, %v1429_v1  ;;  %v622_v12 = vpop.f32.mrb[37].mxu0 }
 0x1d2   :  { %v623_v13 = vadd.f32 %v1429_v1, %v622_v12 }
 0x1d3   :  { %766 = vst [vmem:[%s1564_s5 + $0x28] sm:$0xff] %v628_v11 }
 0x1d4   :  { %765 = vst [vmem:[%s1564_s5 + $0x20] sm:$0xff] %v623_v13  ;;  %v1014_v14 = vpop.f32.mrb[0].mxu1 }
 0x1d5   :  { %v638_v15 = vadd.f32 %v1014_v14, %v1429_v1  ;;  %v632_v16 = vpop.f32.mrb[1].mxu1 }
 0x1d6   :  { %v633_v17 = vadd.f32 %v1429_v1, %v632_v16 }
 0x1d7   :  { %768 = vst [vmem:[%s1564_s5 + $0x38] sm:$0xff] %v638_v15 }
 0x1d8   :  { %767 = vst [vmem:[%s1564_s5 + $0x30] sm:$0xff] %v633_v17  ;;  %v1017_v18 = vpop.f32.mrb[2].mxu1 }
 0x1d9   :  { %v648_v19 = vadd.f32 %v1017_v18, %v1429_v1  ;;  %v642_v20 = vpop.f32.mrb[3].mxu1 }
 0x1da   :  { %v643_v21 = vadd.f32 %v1429_v1, %v642_v20 }
 0x1db   :  { %770 = vst [vmem:[%s1564_s5 + $0x48] sm:$0xff] %v648_v19 }
 0x1dc   :  { %769 = vst [vmem:[%s1564_s5 + $0x40] sm:$0xff] %v643_v21  ;;  %v1020_v22 = vpop.f32.mrb[4].mxu1 }
 0x1dd   :  { %v658_v23 = vadd.f32 %v1020_v22, %v1429_v1  ;;  %v652_v24 = vpop.f32.mrb[5].mxu1 }
 0x1de   :  { %v653_v25 = vadd.f32 %v1429_v1, %v652_v24 }
 0x1df   :  { %772 = vst [vmem:[%s1564_s5 + $0x58] sm:$0xff] %v658_v23 }
 0x1e0   :  { %771 = vst [vmem:[%s1564_s5 + $0x50] sm:$0xff] %v653_v25  ;;  %v1023_v26 = vpop.f32.mrb[6].mxu1 }
 0x1e1   :  { %v668_v27 = vadd.f32 %v1023_v26, %v1429_v1  ;;  %v662_v28 = vpop.f32.mrb[7].mxu1 }
 0x1e2   :  { %v663_v29 = vadd.f32 %v1429_v1, %v662_v28 }
 0x1e3   :  { %774 = vst [vmem:[%s1564_s5 + $0x68] sm:$0xff] %v668_v27 }
 0x1e4   :  { %773 = vst [vmem:[%s1564_s5 + $0x60] sm:$0xff] %v663_v29  ;;  %v1026_v30 = vpop.f32.mrb[8].mxu1 }
 0x1e5   :  { %v678_v31 = vadd.f32 %v1026_v30, %v1429_v1  ;;  %v672_v32 = vpop.f32.mrb[9].mxu1 }
 0x1e6   :  { %v673_v33 = vadd.f32 %v1429_v1, %v672_v32 }
 0x1e7   :  { %776 = vst [vmem:[%s1564_s5 + $0x78] sm:$0xff] %v678_v31 }
 0x1e8   :  { %775 = vst [vmem:[%s1564_s5 + $0x70] sm:$0xff] %v673_v33  ;;  %v1029_v34 = vpop.f32.mrb[10].mxu1 }
 0x1e9   :  { %v688_v35 = vadd.f32 %v1029_v34, %v1429_v1  ;;  %v682_v36 = vpop.f32.mrb[11].mxu1 }
 0x1ea   :  { %v683_v37 = vadd.f32 %v1429_v1, %v682_v36 }
 0x1eb   :  { %778 = vst [vmem:[%s1564_s5 + $0x88] sm:$0xff] %v688_v35 }
 0x1ec   :  { %777 = vst [vmem:[%s1564_s5 + $0x80] sm:$0xff] %v683_v37  ;;  %v1032_v38 = vpop.f32.mrb[12].mxu1 }
 0x1ed   :  { %v698_v39 = vadd.f32 %v1032_v38, %v1429_v1  ;;  %v692_v40 = vpop.f32.mrb[13].mxu1 }
 0x1ee   :  { %v693_v41 = vadd.f32 %v1429_v1, %v692_v40 }
 0x1ef   :  { %780 = vst [vmem:[%s1564_s5 + $0x98] sm:$0xff] %v698_v39 }
 0x1f0   :  { %779 = vst [vmem:[%s1564_s5 + $0x90] sm:$0xff] %v693_v41  ;;  %v1035_v42 = vpop.f32.mrb[14].mxu1 }
 0x1f1   :  { %v708_v43 = vadd.f32 %v1035_v42, %v1429_v1  ;;  %v702_v44 = vpop.f32.mrb[15].mxu1 }
 0x1f2   :  { %v703_v45 = vadd.f32 %v1429_v1, %v702_v44 }
 0x1f3   :  { %782 = vst [vmem:[%s1564_s5 + $0xa8] sm:$0xff] %v708_v43 }
 0x1f4   :  { %781 = vst [vmem:[%s1564_s5 + $0xa0] sm:$0xff] %v703_v45  ;;  %v1038_v46 = vpop.f32.mrb[16].mxu1 }
 0x1f5   :  { %v718_v47 = vadd.f32 %v1038_v46, %v1429_v1  ;;  %v712_v48 = vpop.f32.mrb[17].mxu1 }
 0x1f6   :  { %v713_v49 = vadd.f32 %v1429_v1, %v712_v48 }
 0x1f7   :  { %784 = vst [vmem:[%s1564_s5 + $0xb8] sm:$0xff] %v718_v47 }
 0x1f8   :  { %783 = vst [vmem:[%s1564_s5 + $0xb0] sm:$0xff] %v713_v49  ;;  %v1041_v50 = vpop.f32.mrb[18].mxu1 }
 0x1f9   :  { %v728_v62 = vadd.f32 %v1041_v50, %v1429_v1  ;;  %v722_v51 = vpop.f32.mrb[19].mxu1 }
 0x1fa   :  { %v723_v52 = vadd.f32 %v1429_v1, %v722_v51 }
 0x1fb   :  { %786 = vst [vmem:[%s1564_s5 + $0xc8] sm:$0xff] %v728_v62 }
 0x1fc   :  { %785 = vst [vmem:[%s1564_s5 + $0xc0] sm:$0xff] %v723_v52  ;;  %v1044_v53 = vpop.f32.mrb[20].mxu1 }
 0x1fd   :  { %v738_v54 = vadd.f32 %v1044_v53, %v1429_v1  ;;  %v732_v55 = vpop.f32.mrb[21].mxu1 }
 0x1fe   :  { %v733_v56 = vadd.f32 %v1429_v1, %v732_v55 }
 0x1ff   :  { %788 = vst [vmem:[%s1564_s5 + $0xd8] sm:$0xff] %v738_v54 }
 0x200   :  { %787 = vst [vmem:[%s1564_s5 + $0xd0] sm:$0xff] %v733_v56  ;;  %v1047_v57 = vpop.f32.mrb[22].mxu1 }
 0x201   :  { %v748_v58 = vadd.f32 %v1047_v57, %v1429_v1  ;;  %v742_v59 = vpop.f32.mrb[23].mxu1 }
 0x202   :  { %v743_v60 = vadd.f32 %v1429_v1, %v742_v59 }
 0x203   :  { %790 = vst [vmem:[%s1564_s5 + $0xe8] sm:$0xff] %v748_v58 }
 0x204   :  { %789 = vst [vmem:[%s1564_s5 + $0xe0] sm:$0xff] %v743_v60  ;;  %v1050_v61 = vpop.f32.mrb[24].mxu1 }
 0x205   :  { %v758_v63 = vadd.f32 %v1050_v61, %v1429_v1  ;;  %v752_v0 = vpop.f32.mrb[25].mxu1 }
 0x206   :  { %v753_v2 = vadd.f32 %v1429_v1, %v752_v0 }
 0x207   :  { %792 = vst [vmem:[%s1564_s5 + $0xf8] sm:$0xff] %v758_v63 }
 0x208   :  { %791 = vst [vmem:[%s1564_s5 + $0xf0] sm:$0xff] %v753_v2 }

</bundles_post_ra>
